<compile_context>
chip_gen: v6e
topology: v6e:2x2x1
jax: 0.10.0
libtpu: 0.0.40
codegen_flags: <defaults>
</compile_context>

<pallas_src>
import functools

import jax
import jax.numpy as jnp
from jax.experimental import pallas as pl
from jax.experimental.pallas import tpu as pltpu


def _inference_net_kernel(x1_ref, x2_ref, w1_ref, w2_ref, b_ref, mu_ref, *,
                          one_minus_gamma):
    """x1/x2: (N, D); w1: (2D, H); w2: gamma*W2 (H, D); b: packed (2, max(H,D))."""
    hidden = w1_ref.shape[1]
    d = w2_ref.shape[1]

    # Batch means (dim=0, keepdim=True) — cross-sublane reduce on the XLU.
    m1 = jnp.mean(x1_ref[...], axis=0, keepdims=True)            # (1, D)
    m2 = jnp.mean(x2_ref[...], axis=0, keepdims=True)            # (1, D)

    # concat([m1, m2]) along lanes -> single MXU matmul against full W1.
    m = jnp.concatenate([m1, m2], axis=-1)                       # (1, 2D)

    # layer1 + ReLU.  b1 lives in row 0 of the packed bias slab.
    h = (jnp.dot(m, w1_ref[...], preferred_element_type=jnp.float32)
         + b_ref[0:1, :hidden])                                  # (1, H)
    h = jnp.maximum(h, 0.0)
    # Dropout: identity at inference.

    # output_mu with gamma pre-folded: out = gamma*(h @ W2 + b2).
    out = (jnp.dot(h, w2_ref[...], preferred_element_type=jnp.float32)
           + b_ref[1:2, :d])                                     # (1, D)

    mu_ref[...] = out + one_minus_gamma * m1


def inference_net_forward(input1, input2, gamma, params):
    """input1, input2: (N, input_dim) f32 (or None -> zeros). gamma: float.

    params: dict with
      w1: (2*input_dim, hidden_dim)   b1: (hidden_dim,)
      w2: (hidden_dim, input_dim)     b2: (input_dim,)
    Returns (mu, logstd), each (1, input_dim) f32.
    """
    d = params["w2"].shape[1]
    hidden = params["w1"].shape[1]

    if input1 is None:
        input1 = jnp.zeros((1, d), jnp.float32)
    if input2 is None:
        input2 = jnp.zeros((1, d), jnp.float32)

    gamma = float(gamma)
    w1 = params["w1"]                                   # passed unsplit
    w2_g = gamma * params["w2"]                         # gamma folded into W2
    wmax = max(hidden, d)
    b_packed = jnp.zeros((2, wmax), jnp.float32)
    b_packed = b_packed.at[0, :hidden].set(params["b1"])
    b_packed = b_packed.at[1, :d].set(gamma * params["b2"])

    vmem = pl.BlockSpec(memory_space=pltpu.VMEM)        # whole-array blocks (tiny shapes)

    kernel = functools.partial(_inference_net_kernel,
                               one_minus_gamma=1.0 - gamma)

    mu = pl.pallas_call(
        kernel,
        out_shape=jax.ShapeDtypeStruct((1, d), jnp.float32),
        in_specs=[vmem, vmem, vmem, vmem, vmem],
        out_specs=vmem,
    )(input1, input2, w1, w2_g, b_packed)

    # logstd is a compile-time constant -> no reason to write it from the kernel.
    logstd = jnp.full((1, d), -10.0, jnp.float32)
    return mu, logstd


def init_params(key, input_dim, hidden_dim):
    """Deterministic PyTorch-Linear-style init (uniform +/- 1/sqrt(fan_in))."""
    k1, k2, k3, k4 = jax.random.split(key, 4)
    bound1 = 1.0 / jnp.sqrt(2.0 * input_dim)
    bound2 = 1.0 / jnp.sqrt(float(hidden_dim))
    return {
        "w1": jax.random.uniform(k1, (2 * input_dim, hidden_dim), jnp.float32,
                                 -bound1, bound1),
        "b1": jax.random.uniform(k2, (hidden_dim,), jnp.float32, -bound1, bound1),
        "w2": jax.random.uniform(k3, (hidden_dim, input_dim), jnp.float32,
                                 -bound2, bound2),
        "b2": jax.random.uniform(k4, (input_dim,), jnp.float32, -bound2, bound2),
    }


def reference_forward(input1, input2, gamma, params):
    """Pure-JAX reference for correctness check."""
    m1 = jnp.mean(input1, axis=0, keepdims=True)
    m2 = jnp.mean(input2, axis=0, keepdims=True)
    x = jnp.concatenate([m1, m2], axis=-1)
    h = jnp.maximum(x @ params["w1"] + params["b1"], 0.0)
    mu = gamma * (h @ params["w2"] + params["b2"]) + (1.0 - gamma) * m1
    logstd = -10.0 * jnp.ones_like(mu)
    return mu, logstd


if __name__ == "__main__":
    input_dim = 32
    hidden_dim = 64
    batch = 8
    gamma = 0.7

    key = jax.random.PRNGKey(0)
    k_p, k_x1, k_x2 = jax.random.split(key, 3)

    params = init_params(k_p, input_dim, hidden_dim)
    input1 = jax.random.normal(k_x1, (batch, input_dim), jnp.float32)
    input2 = jax.random.normal(k_x2, (batch, input_dim), jnp.float32)

    mu, logstd = inference_net_forward(input1, input2, gamma, params)
    mu = jax.block_until_ready(mu)
    logstd = jax.block_until_ready(logstd)

    mu_ref, logstd_ref = reference_forward(input1, input2, gamma, params)
    assert mu.shape == (1, input_dim) and logstd.shape == (1, input_dim)
    assert jnp.allclose(mu, mu_ref, atol=1e-5, rtol=1e-5)
    assert jnp.allclose(logstd, logstd_ref)

    print("KERNEL_OK")
</pallas_src>

<mosaic_0001>
module attributes {stable_mosaic.version = 11 : i64} {
  func.func @_inference_net_kernel(%arg0: memref<8x32xf32, #tpu.memory_space<vmem>>, %arg1: memref<8x32xf32, #tpu.memory_space<vmem>>, %arg2: memref<64x64xf32, #tpu.memory_space<vmem>>, %arg3: memref<64x32xf32, #tpu.memory_space<vmem>>, %arg4: memref<2x64xf32, #tpu.memory_space<vmem>>, %arg5: memref<1x32xf32, #tpu.memory_space<vmem>>) attributes {dimension_semantics = [], scalar_prefetch = 0 : i64, scratch_operands = 0 : i64, tpu.core_type = #tpu.core_type<tc>} {
    %c0 = arith.constant 0 : index
    %c0_0 = arith.constant 0 : index
    %0 = vector.load %arg0[%c0, %c0_0] : memref<8x32xf32, #tpu.memory_space<vmem>>, vector<8x32xf32>
    %cst = arith.constant dense<0.000000e+00> : vector<32xf32>
    %1 = vector.multi_reduction <add>, %0, %cst [0] : vector<8x32xf32> to vector<32xf32>
    %2 = vector.shape_cast %1 : vector<32xf32> to vector<1x32xf32>
    %cst_1 = arith.constant 8.000000e+00 : f32
    %3 = vector.broadcast %cst_1 : f32 to vector<1x32xf32>
    %4 = arith.divf %2, %3 : vector<1x32xf32>
    %c0_2 = arith.constant 0 : index
    %c0_3 = arith.constant 0 : index
    %5 = vector.load %arg1[%c0_2, %c0_3] : memref<8x32xf32, #tpu.memory_space<vmem>>, vector<8x32xf32>
    %cst_4 = arith.constant dense<0.000000e+00> : vector<32xf32>
    %6 = vector.multi_reduction <add>, %5, %cst_4 [0] : vector<8x32xf32> to vector<32xf32>
    %7 = vector.shape_cast %6 : vector<32xf32> to vector<1x32xf32>
    %cst_5 = arith.constant 8.000000e+00 : f32
    %8 = vector.broadcast %cst_5 : f32 to vector<1x32xf32>
    %9 = arith.divf %7, %8 : vector<1x32xf32>
    %10 = tpu.concatenate %4, %9 in 1 : vector<1x32xf32>, vector<1x32xf32> -> vector<1x64xf32>
    %c0_6 = arith.constant 0 : index
    %c0_7 = arith.constant 0 : index
    %11 = vector.load %arg2[%c0_6, %c0_7] : memref<64x64xf32, #tpu.memory_space<vmem>>, vector<64x64xf32>
    %cst_8 = arith.constant dense<0.000000e+00> : vector<1x64xf32>
    %12 = tpu.matmul %10, %11, %cst_8 {dimension_numbers = #tpu.dot_dimension_numbers<[1], [0], [0], [1], [0, 0, 1, 1], [], []>} : vector<1x64xf32>, vector<64x64xf32>, vector<1x64xf32> -> vector<1x64xf32>
    %c0_9 = arith.constant 0 : index
    %c0_10 = arith.constant 0 : index
    %13 = vector.load %arg4[%c0_9, %c0_10] : memref<2x64xf32, #tpu.memory_space<vmem>>, vector<1x64xf32>
    %14 = arith.addf %12, %13 : vector<1x64xf32>
    %cst_11 = arith.constant 0.000000e+00 : f32
    %15 = vector.broadcast %cst_11 : f32 to vector<1x64xf32>
    %16 = arith.maximumf %14, %15 : vector<1x64xf32>
    %c0_12 = arith.constant 0 : index
    %c0_13 = arith.constant 0 : index
    %17 = vector.load %arg3[%c0_12, %c0_13] : memref<64x32xf32, #tpu.memory_space<vmem>>, vector<64x32xf32>
    %cst_14 = arith.constant dense<0.000000e+00> : vector<1x32xf32>
    %18 = tpu.matmul %16, %17, %cst_14 {dimension_numbers = #tpu.dot_dimension_numbers<[1], [0], [0], [1], [0, 0, 1, 1], [], []>} : vector<1x64xf32>, vector<64x32xf32>, vector<1x32xf32> -> vector<1x32xf32>
    %c1 = arith.constant 1 : index
    %c0_15 = arith.constant 0 : index
    %19 = vector.load %arg4[%c1, %c0_15] : memref<2x64xf32, #tpu.memory_space<vmem>>, vector<1x32xf32>
    %20 = arith.addf %18, %19 : vector<1x32xf32>
    %cst_16 = arith.constant 3.000000e-01 : f32
    %21 = vector.broadcast %cst_16 : f32 to vector<1x32xf32>
    %22 = arith.mulf %21, %4 : vector<1x32xf32>
    %23 = arith.addf %20, %22 : vector<1x32xf32>
    %c0_17 = arith.constant 0 : index
    %c0_18 = arith.constant 0 : index
    %24 = vector.load %arg5[%c0_17, %c0_18] : memref<1x32xf32, #tpu.memory_space<vmem>>, vector<1x32xf32>
    tpu.vector_store %arg5[%c0_17, %c0_18], %23 {strides = array<i32>} : memref<1x32xf32, #tpu.memory_space<vmem>>, vector<1x32xf32>,
    return
  }
}

</mosaic_0001>

<bundles_post_ra>
// kernel: tpu_custom_call.1
= control target key start
LH: loop header
LB: loop body
LE: loop exit
PB: predicated region body
PF: predicated region fallthrough
CT: control target
= control target key end

     0   :  { %vm22_vm0 = vcmask 261120   ;;  %v314_v3 = vmov 0.0   ;;  %vm315_vm1 = vmmov 0   ;;  %s434_s0 = inlined_call_operand.vmem [shape: f32[8,32], index: 0, kind: input, shape index: {}]   ;;  %s435_s1 = inlined_call_operand.vmem [shape: f32[8,32], index: 1, kind: input, shape index: {}]   ;;  %s436_s2 = inlined_call_operand.vmem [shape: f32[64,64], index: 2, kind: input, shape index: {}]   ;;  %s437_s3 = inlined_call_operand.vmem [shape: f32[64,32], index: 3, kind: input, shape index: {}]   ;;  %s438_s4 = inlined_call_operand.vmem [shape: f32[2,64], index: 4, kind: input, shape index: {}]   ;;  %s439_s5 = inlined_call_operand.hbm [shape: f32[1,32], index: 5, kind: output, shape index: {}]  }
   0x1   :  { %v32_v0 = vld [vmem:[%s435_s1] sm:$0xff]  ;;  %v53_v1 = vld [vmem:[%s436_s2 + $0x38] sm:$0xff]  ;;  %250 = vmatprep.subr.mxu0 %v314_v3  ;;  %v52_v4 = vld [vmem:[%s436_s2 + $0x30] sm:$0xff]  ;;  %269 = vmatprep.subr.mxu1 %v314_v3 }
   0x2   :  { %v33_v2 = vsel %vm22_vm0, %v32_v0, 0.0  ;;  %251 = vmatpush3.msra.mxu0 %v53_v1  ;;  %v51_v6 = vld [vmem:[%s436_s2 + $0x28] sm:$0xff]  ;;  %266 = vmatprep.mubr.msk.f32.mxu0 %vm315_vm1, %v314_v3 }
   0x3   :  { %v34_v5 = vrot.slane %v33_v2, 4  ;;  %252 = vmatprep.subr.mxu0 %v314_v3 }
   0x4   :  { %10 = vsyncpa [#allocation3], 0  ;;  %253 = vmatpush3.msra.mxu0 %v52_v4  ;;  %v137_v8 = vld [vmem:[%s437_s3 + $0x38] sm:$0xff]  ;;  %v136_v9 = vld [vmem:[%s437_s3 + $0x30] sm:$0xff]  ;;  %285 = vmatprep.mubr.msk.f32.mxu1 %vm315_vm1, %v314_v3  ;;  %s316_s20 = smov 32   ;;  %vm55_vm2 = vcmask 523264  }
   0x5   :  { %v35_v7 = vadd.f32 %v34_v5, %v33_v2  ;;  %254 = vmatprep.subr.mxu0 %v314_v3  ;;  %v50_v10 = vld [vmem:[%s436_s2 + $0x20] sm:$0xff]  ;;  %270 = vmatpush3.msra.mxu1 %v137_v8  ;;  %v135_v12 = vld [vmem:[%s437_s3 + $0x28] sm:$0xff]  ;;  %v49_v13 = vld [vmem:[%s436_s2 + $0x18] sm:$0xff]  ;;  %s317_s30 = smov [#allocation2]   ;;  %vm214_vm3 = vcmask 253952  }
   0x6   :  { %255 = vmatpush3.msra.mxu0 %v51_v6  ;;  %271 = vmatprep.subr.mxu1 %v314_v3  ;;  %v134_v15 = vld [vmem:[%s437_s3 + $0x20] sm:$0xff]  ;;  %v48_v16 = vld [vmem:[%s436_s2 + $0x10] sm:$0xff]  ;;  %v133_v18 = vld [vmem:[%s437_s3 + $0x18] sm:$0xff]  ;;  %s222_s6 = sshll.u32 %s317_s30, 4  ;;  %s223_s6 = int_to_ptr.vmem [resolvable:$true] %s222_s6 }
   0x7   :  { %v36_v11 = vrot.slane %v35_v7, 2  ;;  %256 = vmatprep.subr.mxu0 %v314_v3  ;;  %272 = vmatpush3.msra.mxu1 %v136_v9  ;;  %v47_v19 = vld [vmem:[%s436_s2 + $0x8] sm:$0xff]  ;;  %v46_v21 = vld [vmem:[%s436_s2] sm:$0xff]  ;;  %v132_v34 = vld [vmem:[%s437_s3 + $0x10] sm:$0xff]  ;;  %s296_s7 = scalar_lea.vmem %s223_s6, 32  ;;  %p297_p1 = scmp.lt.s32.totalorder %s223_s6, %s223_s6 }
   0x8   :  { %257 = vmatpush3.msra.mxu0 %v50_v10  ;;  %273 = vmatprep.subr.mxu1 %v314_v3  ;;  %v21_v23 = vld [vmem:[%s434_s0] sm:$0xff]  ;;  %v131_v35 = vld [vmem:[%s437_s3 + $0x8] sm:$0xff] }
   0x9   :  { %v37_v14 = vadd.f32 %v36_v11, %v35_v7  ;;  %258 = vmatprep.subr.mxu0 %v314_v3  ;;  %274 = vmatpush3.msra.mxu1 %v135_v12  ;;  %v23_v24 = vsel %vm22_vm0, %v21_v23, 0.0  ;;  %v130_v36 = vld [vmem:[%s437_s3] sm:$0xff]  ;;  %s292_s3 = scalar_lea.vmem %s223_s6, 16 }
   0xa   :  { %259 = vmatpush3.msra.mxu0 %v49_v13  ;;  %275 = vmatprep.subr.mxu1 %v314_v3  ;;  %v24_v25 = vrot.slane %v23_v24, 4  ;;  %v54_v37 = vld [vmem:[%s438_s4] sm:$0x1]  ;;  %v138_v42 = vld [vmem:[%s438_s4 + $0x1] sm:$0x1]  ;;  %p293_p0 = scmp.ne.s32.totalorder %s223_s6, %s292_s3  ;;  %p298_p2 = scmp.lt.s32.totalorder %s296_s7, %s292_s3 }
   0xb   :  { %v38_v17 = vrot.slane %v37_v14, 1  ;;  %260 = vmatprep.subr.mxu0 %v314_v3  ;;  %276 = vmatpush3.msra.mxu1 %v134_v15 }
   0xc   :  { %261 = vmatpush3.msra.mxu0 %v48_v16  ;;  %277 = vmatprep.subr.mxu1 %v314_v3  ;;  %v25_v26 = vadd.f32 %v24_v25, %v23_v24  ;;  %p299_p3 = por %p298_p2, %p297_p1 }
   0xd   :  { %v39_v20 = vadd.f32 %v38_v17, %v37_v14  ;;  %262 = vmatprep.subr.mxu0 %v314_v3  ;;  %278 = vmatpush3.msra.mxu1 %v133_v18 }
   0xe   :  { %263 = vmatpush3.msra.mxu0 %v47_v19  ;;  %279 = vmatprep.subr.mxu1 %v314_v3  ;;  %v26_v27 = vrot.slane %v25_v26, 2  ;;  %p300_p4 = pnand %p299_p3, %p293_p0 }
   0xf   :  { %v40_v22 = vmul.f32 0.125, %v39_v20  ;;  %264 = vmatprep.subr.mxu0 %v314_v3  ;;  %280 = vmatpush3.msra.mxu1 %v132_v34 }
  0x10   :  { %265 = vmatpush3.msra.mxu0 %v46_v21  ;;  %v27_v28 = vadd.f32 %v26_v27, %v25_v26  ;;  %281 = vmatprep.subr.mxu1 %v314_v3 }
  0x11   :  { %42 = vrot.lane.b32.xlu0 %v40_v22, %s316_s20  ;;  %282 = vmatpush3.msra.mxu1 %v131_v35 }
  0x12   :  { %v28_v29 = vrot.slane %v27_v28, 1  ;;  %283 = vmatprep.subr.mxu1 %v314_v3 }
  0x13   :  { %284 = vmatpush3.msra.mxu1 %v130_v36 }
  0x14   :  { %v29_v30 = vadd.f32 %v28_v29, %v27_v28 }
  0x16   :  { %v31_v31 = vmul.f32 0.125, %v29_v30 }
  0x18   :  { %v212_v43 = vmul.f32 0.3, %v31_v31 }
  0x83   :  { %v43_v32 = vpop.permute.xlu0 %42 }
  0x84   :  { %v45_v33 = vsel %vm22_vm0, %v31_v31, %v43_v32 }
  0x85   :  { %267 = vmatmul.mubr.msk.f32.vlgmr.msra.gmra.mxu0 %vm55_vm2, %v45_v33 }
 0x145   :  { %v125_v38 = vpop.f32.mrf.mxu0 }
 0x146   :  { %v126_v39 = vadd.f32 %v125_v38, %v54_v37 }
 0x147   :  { %v268_v40 = vpop.f32.mrf.mxu0 }
 0x148   :  { %v129_v41 = vmax.f32 %v126_v39, 0.0 }
 0x14a   :  { %286 = vmatmul.mubr.msk.f32.vlgmr.msra.gmra.mxu1 %vm55_vm2, %v129_v41 }
 0x20a   :  { %v208_v44 = vpop.f32.mrf.mxu1 }
 0x20b   :  { %v209_v45 = vadd.f32 %v208_v44, %v138_v42 }
 0x20c   :  { %v287_v46 = vpop.f32.mrf.mxu1 }
 0x20d   :  { %v213_v47 = vadd.f32 %v212_v43, %v209_v45 }
 0x20f   :  { %215 = vst.msk [vmem:[#allocation2] sm:$0x1] %vm214_vm3, %v213_v47 }
 0x210   :  { %303 = shalt.err (!%p300_p4)
}
 0x211   :  { %225 = dma.vmem_to_hbm [thread:$0]  %s223_s6, 16, %s439_s5, [#allocation3]  }
 0x212   :  { %312 = dma.done.wait [#allocation3], 16  }
 0x213   :  { %313 = vsyncadd [#allocation3], 4294967280 }
 0x214   :  { %229 = vsyncpa [#allocation3], 1 }

</bundles_post_ra>
